<compile_context>
chip_gen: v6e
topology: v6e:2x2x1
jax: 0.10.0
libtpu: 0.0.40
codegen_flags: <defaults>
</compile_context>

<pallas_src>
import jax
import jax.numpy as jnp
from jax.experimental import pallas as pl
from jax.experimental.pallas import tpu as pltpu

_LANE = 128
_SUBLANE_MULTIPLE = 32               # safe second-minor multiple for 32/16/8-bit packing
_TARGET_BLOCK_BYTES = 4 * 1024 * 1024  # per live buffer (in or out); 4 bufs live ≈ 16 MiB
_SMALL_FALLBACK_ELEMS = 256 * 1024     # below this a single fused-XLA pass is faster
_COL_CANDIDATES = (8192, 4096, 2048, 1024, 512, 256, 128)  # lane-dense output widths


def _quant_kernel(params_ref, x_ref, o_ref):
    """Eval-mode symmetric fake-quant: round(x * inv_scale), clamp, dequant.

    params_ref (SMEM, f32[4]) = [scale, inv_scale, qmin, qmax].
    Compute is done in f32 regardless of I/O dtype (v5e has no bf16 VALU); the
    only dtype-sensitive steps are the load upcast and the store downcast.
    """
    scale = params_ref[0]
    inv_scale = params_ref[1]
    qmin = params_ref[2]
    qmax = params_ref[3]
    x = x_ref[...].astype(jnp.float32)
    x_q = jnp.clip(jnp.round(x * inv_scale), qmin, qmax)   # zero_point = 0 (symmetric)
    o_ref[...] = (x_q * scale).astype(o_ref.dtype)


def _quant_params(soft_bits, range_scale, min_bits, max_bits):
    """Scalar parameter math (cheap plain-JAX glue), eval-mode integer bitwidth.

    NOTE: for B >= ~25 (and max_bits=32 in particular) qmax = 2^(B-1)-1 is not
    exactly representable in f32 and round(x*inv_scale) loses integer precision
    above 2^24 — same behaviour as a torch-in-f32 implementation.
    """
    bit_width = jnp.clip(jnp.asarray(soft_bits, jnp.float32), min_bits, max_bits)
    B = jnp.round(bit_width)                    # integer bitwidth (eval path)
    half = jnp.exp2(B - 1.0)
    qmin = -half                                # -2**(B-1)
    qmax = half - 1.0                           #  2**(B-1) - 1
    scale = jnp.asarray(range_scale, jnp.float32) / half
    inv_scale = 1.0 / (scale + 1e-8)            # hoist the divide out of the kernel
    return scale, inv_scale, qmin, qmax


def _fake_quant_jax(x, scale, inv_scale, qmin, qmax):
    """Fused elementwise fallback (small tensors / ragged tails); f32 compute."""
    xf = x.astype(jnp.float32)
    x_q = jnp.clip(jnp.round(xf * inv_scale), qmin, qmax)
    return (x_q * scale).astype(x.dtype)


def _choose_cols(n):
    """Pick a lane-dense column width that divides n (prefer >= 8 rows)."""
    for c in _COL_CANDIDATES:
        if n % c == 0 and (n // c) >= 8:
            return c
    for c in _COL_CANDIDATES:
        if n % c == 0:
            return c
    return None


def _quantize_pallas_flat(flat, params, donate_input):
    """Run the streaming kernel on a 1-D, 128-aligned array. Returns flat output."""
    n = flat.shape[0]
    cols = _choose_cols(n)          # n is a multiple of 128, so this never fails
    rows = n // cols
    x2d = flat.reshape(rows, cols)  # layout-preserving reshape (no copy)

    itemsize = flat.dtype.itemsize
    block_rows = _TARGET_BLOCK_BYTES // (cols * itemsize)
    block_rows = max(_SUBLANE_MULTIPLE,
                     (block_rows // _SUBLANE_MULTIPLE) * _SUBLANE_MULTIPLE)
    if block_rows >= rows:
        block_rows = rows           # full-dim block is always legal
    grid = (pl.cdiv(rows, block_rows),)   # ragged last block handled by Pallas

    # 2 in-buffers + 2 out-buffers live (auto double-buffering) + headroom for
    # internal scratch; cap well under v7x's 64 MiB physical VMEM.
    block_bytes = block_rows * cols * itemsize
    vmem_limit = int(min(48 * 2**20, max(24 * 2**20, 4 * block_bytes + 8 * 2**20)))

    out2d = pl.pallas_call(
        _quant_kernel,
        out_shape=jax.ShapeDtypeStruct((rows, cols), flat.dtype),
        grid_spec=pltpu.PrefetchScalarGridSpec(
            num_scalar_prefetch=0,
            grid=grid,
            in_specs=[
                pl.BlockSpec(memory_space=pltpu.MemorySpace.SMEM),   # packed scalars
                pl.BlockSpec((block_rows, cols), lambda i: (i, 0)),
            ],
            out_specs=pl.BlockSpec((block_rows, cols), lambda i: (i, 0)),
        ),
        compiler_params=pltpu.CompilerParams(
            # TODO(synk): on v7x verify in xprof that both TensorCores stream;
            # if not, switch this axis to pltpu.CORE_PARALLEL (or core_map).
            dimension_semantics=("parallel",),
            vmem_limit_bytes=vmem_limit,
        ),
        # TODO(synk): if xprof shows DMA bubbles at block boundaries on v7x,
        # sweep pipeline_mode=pl.Buffered(3) on the data input spec.
        input_output_aliases=({1: 0} if donate_input else {}),
    )(params, x2d)
    return out2d.reshape(-1)


def learned_bitwidth_quantize(x, soft_bits, range_scale, *,
                              min_bits=2.0, max_bits=32.0,
                              force_kernel=False, donate_input=False):
    """JAX/Pallas equivalent of LearnedBitwidthQuantizer.forward in eval mode
    (symmetric=True). Scalar parameter math is plain-JAX glue; the elementwise
    quant-dequant hot path runs in the Pallas kernel. I/O dtype is preserved
    (bf16 in+out halves HBM traffic); compute is f32 inside the kernel.

    force_kernel : run the Pallas kernel even below the small-tensor threshold.
    donate_input : alias the input HBM buffer to the output (caller must be
                   able to donate x) — halves the op's peak HBM footprint.
    """
    if x.dtype not in (jnp.float32, jnp.bfloat16, jnp.float16):
        # TODO(synk): integer / f64 inputs are routed through f32 I/O.
        x = x.astype(jnp.float32)
    orig_shape = x.shape
    n = x.size

    scale, inv_scale, qmin, qmax = _quant_params(soft_bits, range_scale,
                                                 min_bits, max_bits)

    n_aligned = (n // _LANE) * _LANE
    if (not force_kernel and n < _SMALL_FALLBACK_ELEMS) or n_aligned == 0:
        # Small tensors: pallas_call launch + glue dominates; one fused XLA
        # elementwise pass is already at roofline.
        return _fake_quant_jax(x, scale, inv_scale, qmin, qmax)

    params = jnp.stack([scale, inv_scale, qmin, qmax]).astype(jnp.float32)
    flat = x.reshape(-1)

    if n_aligned == n:
        out_flat = _quantize_pallas_flat(flat, params, donate_input)
    else:
        # Ragged size (rare): no jnp.pad round-trip — kernel on the 128-aligned
        # prefix, fused JAX on the <=127-element tail.
        prefix_out = _quantize_pallas_flat(flat[:n_aligned], params,
                                           donate_input=False)
        tail_out = _fake_quant_jax(flat[n_aligned:], scale, inv_scale, qmin, qmax)
        out_flat = jnp.concatenate([prefix_out, tail_out])

    return out_flat.reshape(orig_shape)


def reference_quantize_inv(x, soft_bits, range_scale, min_bits=2.0, max_bits=32.0):
    """Pure-JAX reference using the same hoisted reciprocal as the kernel."""
    scale, inv_scale, qmin, qmax = _quant_params(soft_bits, range_scale,
                                                 min_bits, max_bits)
    x_q = jnp.clip(jnp.round(x.astype(jnp.float32) * inv_scale), qmin, qmax)
    return (x_q * scale).astype(x.dtype)


def reference_quantize_div(x, soft_bits, range_scale, min_bits=2.0, max_bits=32.0):
    """Faithful transcription of the torch eval-mode forward (division form)."""
    B = jnp.round(jnp.clip(jnp.asarray(soft_bits, jnp.float32), min_bits, max_bits))
    half = jnp.exp2(B - 1.0)
    qmin, qmax = -half, half - 1.0
    scale = jnp.asarray(range_scale, jnp.float32) / half
    x_scaled = x.astype(jnp.float32) / (scale + 1e-8)
    x_q = jnp.clip(jnp.round(x_scaled), qmin, qmax)
    return (x_q * scale).astype(x.dtype)


if __name__ == "__main__":
    key = jax.random.PRNGKey(0)
    key_main, key_rag = jax.random.split(key)

    # Deterministic parameters matching the module's __init__ defaults.
    soft_bits = jnp.float32(8.0)       # nn.Parameter(torch.tensor(8.0))
    range_scale = jnp.float32(0.0002)  # nn.Parameter(torch.tensor(0.0002))
    # TODO(synk): training-mode STE pass-through (x + (x_dq - x).detach()) and
    # the stateful calibrate() running-min/max buffers are training machinery;
    # only the eval-mode forward is kernelized.

    # Small NCHW input consistent with a conv activation (batch=2, channels=4, 16x16).
    x = jax.random.normal(key_main, (2, 4, 16, 16), dtype=jnp.float32) * 1e-4
    ref = reference_quantize_inv(x, soft_bits, range_scale)

    # 1) Default path — small tensor takes the fused-JAX fallback.
    out_fb = jax.block_until_ready(learned_bitwidth_quantize(x, soft_bits, range_scale))
    assert out_fb.shape == x.shape and out_fb.dtype == x.dtype
    assert jnp.allclose(out_fb, ref, atol=1e-7, rtol=1e-5)

    # 2) Force the Pallas kernel on the same tensor (exercises compile + run).
    out_k = jax.block_until_ready(
        learned_bitwidth_quantize(x, soft_bits, range_scale, force_kernel=True))
    assert out_k.shape == x.shape and out_k.dtype == jnp.float32
    assert jnp.allclose(out_k, ref, atol=1e-7, rtol=1e-5)

    # Loose semantic check vs the faithful division form: any difference can be
    # at most one quantization step (only at an exact rounding boundary).
    ref_div = reference_quantize_div(x, soft_bits, range_scale)
    step = float(range_scale) / float(2 ** (8 - 1))
    assert float(jnp.max(jnp.abs(out_k - ref_div))) <= 1.01 * step

    # 3) bf16 I/O path (the big bytes-moved win): f32 compute, bf16 in/out.
    x_bf16 = x.astype(jnp.bfloat16)
    out_bf16 = jax.block_until_ready(
        learned_bitwidth_quantize(x_bf16, soft_bits, range_scale, force_kernel=True))
    assert out_bf16.dtype == jnp.bfloat16 and out_bf16.shape == x.shape
    ref_bf16 = reference_quantize_inv(x_bf16, soft_bits, range_scale)
    assert jnp.allclose(out_bf16.astype(jnp.float32), ref_bf16.astype(jnp.float32),
                        atol=1e-6, rtol=1e-2)

    # 4) Ragged size: 128-aligned prefix through the kernel, tail in plain JAX.
    x_rag = jax.random.normal(key_rag, (2, 4, 17, 15), dtype=jnp.float32) * 1e-4
    out_rag = jax.block_until_ready(
        learned_bitwidth_quantize(x_rag, soft_bits, range_scale, force_kernel=True))
    ref_rag = reference_quantize_inv(x_rag, soft_bits, range_scale)
    assert out_rag.shape == x_rag.shape
    assert jnp.allclose(out_rag, ref_rag, atol=1e-7, rtol=1e-5)

    print("KERNEL_OK")
</pallas_src>

<mosaic_0001>
module attributes {stable_mosaic.version = 11 : i64} {
  func.func @_quant_kernel(%arg0: i32, %arg1: memref<4xf32, #tpu.memory_space<smem>>, %arg2: memref<8x256xf32, #tpu.memory_space<vmem>>, %arg3: memref<8x256xf32, #tpu.memory_space<vmem>>) attributes {dimension_semantics = [#tpu.dimension_semantics<parallel>], iteration_bounds = array<i64: 1>, scalar_prefetch = 0 : i64, scratch_operands = 0 : i64, tpu.core_type = #tpu.core_type<tc>, window_params = [{transform_indices = @transform_0, window_bounds = array<i64: 4>}, {transform_indices = @transform_1, window_bounds = array<i64: 8, 256>}, {transform_indices = @transform_2, window_bounds = array<i64: 8, 256>}]} {
    %c0 = arith.constant 0 : index
    %0 = memref.load %arg1[%c0] : memref<4xf32, #tpu.memory_space<smem>>
    %c1 = arith.constant 1 : index
    %1 = memref.load %arg1[%c1] : memref<4xf32, #tpu.memory_space<smem>>
    %c2 = arith.constant 2 : index
    %2 = memref.load %arg1[%c2] : memref<4xf32, #tpu.memory_space<smem>>
    %c3 = arith.constant 3 : index
    %3 = memref.load %arg1[%c3] : memref<4xf32, #tpu.memory_space<smem>>
    %c0_0 = arith.constant 0 : index
    %c0_1 = arith.constant 0 : index
    %4 = vector.load %arg2[%c0_0, %c0_1] : memref<8x256xf32, #tpu.memory_space<vmem>>, vector<8x256xf32>
    %5 = vector.broadcast %1 : f32 to vector<8x256xf32>
    %6 = arith.mulf %4, %5 : vector<8x256xf32>
    %7 = math.roundeven %6 : vector<8x256xf32>
    %8 = vector.broadcast %2 : f32 to vector<8x256xf32>
    %9 = arith.maximumf %8, %7 : vector<8x256xf32>
    %10 = vector.broadcast %3 : f32 to vector<8x256xf32>
    %11 = arith.minimumf %10, %9 : vector<8x256xf32>
    %12 = vector.broadcast %0 : f32 to vector<8x256xf32>
    %13 = arith.mulf %11, %12 : vector<8x256xf32>
    %c0_2 = arith.constant 0 : index
    %c0_3 = arith.constant 0 : index
    %14 = vector.load %arg3[%c0_2, %c0_3] : memref<8x256xf32, #tpu.memory_space<vmem>>, vector<8x256xf32>
    tpu.vector_store %arg3[%c0_2, %c0_3], %13 {strides = array<i32>} : memref<8x256xf32, #tpu.memory_space<vmem>>, vector<8x256xf32>,
    return
  }
  func.func @transform_0(%arg0: i32) -> i32 {
    %c0_i32 = arith.constant 0 : i32
    %c0_i32_0 = arith.constant 0 : i32
    return %c0_i32 : i32
  }
  func.func @transform_1(%arg0: i32) -> (i32, i32) {
    %c0_i32 = arith.constant 0 : i32
    %c0_i32_0 = arith.constant 0 : i32
    return %arg0, %c0_i32 : i32, i32
  }
  func.func @transform_2(%arg0: i32) -> (i32, i32) {
    %c0_i32 = arith.constant 0 : i32
    %c0_i32_0 = arith.constant 0 : i32
    return %arg0, %c0_i32 : i32, i32
  }
}

</mosaic_0001>

<bundles_post_ra>
// kernel: tpu_custom_call.1
= control target key start
LH: loop header
LB: loop body
LE: loop exit
PB: predicated region body
PF: predicated region fallthrough
CT: control target
= control target key end

     0   :  { %7 = vsyncpa [#allocation5], 0  ;;  %s176_s0 = inlined_call_operand.hbm [shape: f32[4], index: 0, kind: input, shape index: {}]   ;;  %s177_s1 = inlined_call_operand.hbm [shape: f32[8,256], index: 1, kind: input, shape index: {}]   ;;  %s178_s2 = inlined_call_operand.hbm [shape: f32[8,256], index: 2, kind: output, shape index: {}]  }
   0x1   :  { %8 = vsyncpa [#allocation3], 0 }
   0x2   :  { %9 = vsyncpa [#allocation4], 0  ;;  %s149_s9 = smov [#allocation2]   ;;  %s150_s12 = smov [#allocation6]  }
   0x3   :  { %17 = dma.hbm_to_smem %s176_s0, 16, %s149_s9, [#allocation5]  }
   0x4   :  { %s24_s13 = sshll.u32 %s150_s12, 4  ;;  %s25_s13 = int_to_ptr.vmem [resolvable:$true] %s24_s13 }
   0x5   :  { %s111_s14 = scalar_lea.vmem %s25_s13, 256  ;;  %p116_p1 = scmp.lt.s32.totalorder %s25_s13, %s25_s13 }
   0x6   :  { %p112_p0 = scmp.ne.s32.totalorder %s25_s13, %s111_s14  ;;  %p117_p2 = scmp.lt.s32.totalorder %s111_s14, %s111_s14 }
   0x8   :  { %p118_p3 = por %p117_p2, %p116_p1 }
   0xa   :  { %p119_p4 = pnand %p118_p3, %p112_p0 }
   0xc   :  { %122 = shalt.err (!%p119_p4)
}
   0xd   :  { %27 = dma.hbm_to_vmem [thread:$0]  %s177_s1, 256, %s25_s13, [#allocation3]  }
   0xe   :  { %143 = dma.done.wait [#allocation5], 16  }
   0xf   :  { %144 = vsyncadd [#allocation5], 4294967280 }
  0x10   :  { %145 = dma.done.wait [#allocation3], 256  }
  0x11   :  { %146 = vsyncadd [#allocation3], 4294967040 }
  0x12   :  { %34 = sfence }
  0x13   :  { %s73_s0 = sld [smem:[#allocation2 + $0x1]]  ;;  %v39_v0 = vld [vmem:[#allocation6] sm:$0xff]  ;;  %v40_v1 = vld [vmem:[#allocation6 + $0x8] sm:$0xff]  ;;  %s151_s1 = smov [#allocation7]  }
  0x14   :  { %s74_s17 = sld [smem:[#allocation2 + $0x2]]  ;;  %s63_s20 = sshll.u32 %s151_s1, 4  ;;  %s64_s20 = int_to_ptr.vmem [resolvable:$true] %s63_s20 }
  0x15   :  { %s75_s18 = sld [smem:[#allocation2 + $0x3]]  ;;  %s123_s21 = scalar_lea.vmem %s64_s20, 256 }
  0x16   :  { %s35_s19 = sld [smem:[#allocation2]]  ;;  %p124_p5 = scmp.ne.s32.totalorder %s64_s20, %s123_s21 }
  0x17   :  { %p128_p6 = scmp.lt.s32.totalorder %s64_s20, %s64_s20  ;;  %p129_p7 = scmp.lt.s32.totalorder %s123_s21, %s123_s21 }
  0x19   :  { %v41_v2 = vstv %s73_s0  ;;  %p130_p8 = por %p129_p7, %p128_p6 }
  0x1a   :  { %v42_v3 = vmul.f32 %v41_v2, %v39_v0  ;;  %v43_v4 = vmul.f32 %v41_v2, %v40_v1  ;;  %v46_v16 = vstv %s74_s17 }
  0x1b   :  { %v49_v19 = vstv %s75_s18  ;;  %p131_p9 = pnand %p130_p8, %p124_p5 }
  0x1c   :  { %v78_v5 = vcvt.f32.s32 %v42_v3  ;;  %v76_v6 = vand.u32 2147483647, %v42_v3  ;;  %v86_v7 = vcvt.f32.s32 %v43_v4  ;;  %v81_v9 = vand.u32 2147483648, %v42_v3 }
  0x1d   :  { %v84_v10 = vand.u32 2147483647, %v43_v4  ;;  %v89_v12 = vand.u32 2147483648, %v43_v4  ;;  %v52_v22 = vstv %s35_s19 }
  0x1e   :  { %v79_v8 = vcvt.s32.f32 %v78_v5  ;;  %v87_v11 = vcvt.s32.f32 %v86_v7  ;;  %vm77_vm0 = vcmp.lt.f32.partialorder %v76_v6, 8388608.0 }
  0x1f   :  { %vm85_vm1 = vcmp.lt.f32.partialorder %v84_v10, 8388608.0 }
  0x20   :  { %v80_v13 = vand.u32 2147483647, %v79_v8  ;;  %v88_v14 = vand.u32 2147483647, %v87_v11 }
  0x22   :  { %v82_v15 = vor.u32 %v81_v9, %v80_v13  ;;  %v90_v17 = vor.u32 %v89_v12, %v88_v14 }
  0x24   :  { %v83_v18 = vsel %vm77_vm0, %v82_v15, %v42_v3  ;;  %v91_v21 = vsel %vm85_vm1, %v90_v17, %v43_v4 }
  0x25   :  { %v47_v20 = vmax.f32 %v46_v16, %v83_v18  ;;  %v48_v23 = vmax.f32 %v46_v16, %v91_v21 }
  0x27   :  { %v50_v24 = vmin.f32 %v49_v19, %v47_v20  ;;  %v51_v25 = vmin.f32 %v49_v19, %v48_v23 }
  0x29   :  { %v53_v26 = vmul.f32 %v52_v22, %v50_v24  ;;  %v54_v27 = vmul.f32 %v52_v22, %v51_v25 }
  0x2b   :  { %55 = vst [vmem:[#allocation7] sm:$0xff] %v53_v26  ;;  %56 = vst [vmem:[#allocation7 + $0x8] sm:$0xff] %v54_v27 }
  0x2c   :  { %134 = shalt.err (!%p131_p9)
}
  0x2d   :  { %66 = dma.vmem_to_hbm [thread:$0]  %s64_s20, 256, %s178_s2, [#allocation4]  }
  0x2e   :  { %147 = dma.done.wait [#allocation4], 256  }
  0x2f   :  { %148 = vsyncadd [#allocation4], 4294967040 }
  0x30   :  { %70 = vsyncpa [#allocation3], 1 }
  0x31   :  { %71 = vsyncpa [#allocation4], 1 }
  0x32   :  { %72 = vsyncpa [#allocation5], 1 }

</bundles_post_ra>
